<compile_context>
chip_gen: v5e
topology: v5e:2x2
jax: 0.10.0
libtpu: 0.0.40
codegen_flags: <defaults>
</compile_context>

<pallas_src>
import math
from functools import partial

import numpy as np
import jax
import jax.numpy as jnp
from jax.experimental import pallas as pl
from jax.experimental.pallas import tpu as pltpu

LANES = 128
SUBLANES = 8


def _rup(x, m):
    return ((x + m - 1) // m) * m


# ----------------------------------------------------------------------------
# One-time parameter packing: all weights/biases -> one (rows, 128) f32 slab.
# ----------------------------------------------------------------------------
def prepare_vae_params(params):
    (w_eh, b_eh, w_emu, b_emu, w_elv, b_elv,
     w_dh, b_dh, w_dmu, b_dmu, w_dlv, b_dlv) = params
    d_in, h = w_eh.shape
    l = w_emu.shape[1]

    dp = _rup(d_in, LANES)                             # padded x width / W_eh rows
    p = _rup(max(h, 2 * l, l + d_in + 1), LANES)       # common padded lane width

    def block(rows, pieces):
        out = jnp.zeros((rows, p), jnp.float32)
        for r, c, a in pieces:
            out = out.at[r:r + a.shape[0], c:c + a.shape[1]].set(
                a.astype(jnp.float32))
        return out

    blocks = [
        # encoder hidden: h = relu(x @ W + b)
        ("w_eh",  block(dp, [(0, 0, w_eh)])),
        ("b_eh",  block(SUBLANES, [(0, 0, b_eh)])),
        # fused encoder heads -> columns [mu(L) | logvar(L) | 0...]
        ("w_ehd", block(p, [(0, 0, w_emu), (0, l, w_elv)])),
        ("b_ehd", block(SUBLANES, [(0, 0, b_emu), (0, l, b_elv)])),
        # decoder hidden (K = L contraction, done on the VPU in-kernel)
        ("w_dh",  block(_rup(l, SUBLANES), [(0, 0, w_dh)])),
        ("b_dh",  block(SUBLANES, [(0, 0, b_dh)])),
        # fused decoder heads, columns pre-shifted by L so z can fill cols [0:L]
        ("w_dhd", block(p, [(0, l, w_dmu), (0, l + d_in, w_dlv)])),
        ("b_dhd", block(SUBLANES, [(0, l, b_dmu), (0, l + d_in, b_dlv)])),
    ]

    offsets, parts, row = {}, [], 0
    for name, blk in blocks:
        offsets[name] = row
        row += blk.shape[0]
        parts.append(blk)
    w_slab = jnp.concatenate(parts, axis=0)            # (rows, P), rows % 8 == 0

    layout = dict(offsets=offsets, d_in=d_in, h=h, l=l, dp=dp, p=p, rows=row)
    return w_slab, layout


# ----------------------------------------------------------------------------
# Kernel
# ----------------------------------------------------------------------------
def _make_vae_kernel(k, b_pad, layout):
    off = layout["offsets"]
    l, dp, p = layout["l"], layout["dp"], layout["p"]

    r_weh, r_beh = off["w_eh"], off["b_eh"]
    r_wehd, r_behd = off["w_ehd"], off["b_ehd"]
    r_wdh, r_bdh = off["w_dh"], off["b_dh"]
    r_wdhd, r_bdhd = off["w_dhd"], off["b_dhd"]

    def _tile_rows(a):  # (Bp, L) -> (k*Bp, L), sample-major
        return a if k == 1 else jnp.concatenate([a] * k, axis=0)

    def kernel(x_ref, eps_ref, w_ref, enc_ref, out_ref):
        x = x_ref[...]                                               # (Bp, Dp)

        # ---- encoder (computed once): relu(x @ W + b), fused mu|logvar head ----
        h = jnp.maximum(
            jnp.dot(x, w_ref[r_weh:r_weh + dp, :],
                    preferred_element_type=jnp.float32)
            + w_ref[r_beh:r_beh + 1, :], 0.0)                        # (Bp, P)
        enc = (jnp.dot(h, w_ref[r_wehd:r_wehd + p, :],
                       preferred_element_type=jnp.float32)
               + w_ref[r_behd:r_behd + 1, :])                        # (Bp, P): [mu|lv|0]
        enc_ref[...] = enc                                           # full-lane store

        mu = enc[:, 0:l]                                             # (Bp, L)
        std = jnp.exp(0.5 * enc[:, l:2 * l])                         # (Bp, L)

        # ---- reparameterize all k samples in flat 2-D (M, L) layout ----
        eps = eps_ref[...]                                           # (M, L)
        z = eps * _tile_rows(std) + _tile_rows(mu)                   # (M, L)

        # ---- decoder hidden: K=L contraction via VPU broadcast MACs (no MXU) ----
        w_dh = w_ref[r_wdh:r_wdh + l, :]                             # (L, P)
        acc = w_ref[r_bdh:r_bdh + 1, :]                              # (1, P)
        for j in range(l):
            acc = acc + z[:, j:j + 1] * w_dh[j:j + 1, :]             # -> (M, P)
        hd = jnp.maximum(acc, 0.0)                                   # (M, P)

        # ---- fused dec_mu|dec_logvar head (columns already shifted by L) ----
        dec = (jnp.dot(hd, w_ref[r_wdhd:r_wdhd + p, :],
                       preferred_element_type=jnp.float32)
               + w_ref[r_bdhd:r_bdhd + 1, :])                        # (M, P): [0(L)|mu|lv|0]

        out_ref[...] = dec                                           # full-lane store
        out_ref[:, 0:l] = z                                          # fill z columns

    return kernel


# ----------------------------------------------------------------------------
# Wrapper
# ----------------------------------------------------------------------------
def _vae_forward(x, eps_kbl, w_slab, layout):
    """x: (B, D_in); eps_kbl: (k, B, L) sample-major noise.
    Returns PyTorch-shaped (dec_mu, dec_logvar, enc_mu, enc_logvar, z)."""
    b, d_in = x.shape
    k, _, l = eps_kbl.shape
    dp, p, rows = layout["dp"], layout["p"], layout["rows"]
    bp = _rup(b, SUBLANES)
    m = k * bp

    x_p = jnp.pad(x, ((0, bp - b), (0, dp - d_in)))                  # (Bp, Dp)
    eps_flat = jnp.pad(eps_kbl, ((0, 0), (0, bp - b), (0, 0))).reshape(m, l)

    def full(shape):
        nd = len(shape)
        return pl.BlockSpec(shape, lambda *_: (0,) * nd)

    enc, slab = pl.pallas_call(
        _make_vae_kernel(k, bp, layout),
        in_specs=[full((bp, dp)), full((m, l)), full((rows, p))],
        out_specs=[full((bp, p)), full((m, p))],
        out_shape=[jax.ShapeDtypeStruct((bp, p), jnp.float32),
                   jax.ShapeDtypeStruct((m, p), jnp.float32)],
        compiler_params=pltpu.CompilerParams(
            vmem_limit_bytes=32 * 1024 * 1024),
    )(x_p, eps_flat, w_slab)

    # Cheap XLA-side unpacking/unpadding (tiny tensors).
    enc_mu = enc[:b, 0:l]                                            # (B, L)
    enc_lv = enc[:b, l:2 * l]                                        # (B, L)
    out = jnp.transpose(slab.reshape(k, bp, p), (1, 0, 2))[:b]       # (B, k, P)
    z = out[..., 0:l]                                                # (B, k, L)
    dec_mu = out[..., l:l + d_in]                                    # (B, k, D_in)
    dec_lv = out[..., l + d_in:l + d_in + 1]                         # (B, k, 1)
    return dec_mu, dec_lv, enc_mu, enc_lv, z


def make_vae_forward(w_slab, layout):
    """Returns a jitted forward so the few wrapper pads/slices fuse with the call."""
    return jax.jit(partial(_vae_forward, w_slab=w_slab, layout=layout))


# ----------------------------------------------------------------------------
# Params / reference
# ----------------------------------------------------------------------------
def init_params(key, n_input, n_hidden, n_latent):
    """PyTorch-Linear-style init: U(-1/sqrt(fan_in), 1/sqrt(fan_in))."""
    def linear(kk, fan_in, fan_out):
        kw, kb = jax.random.split(kk)
        bound = 1.0 / math.sqrt(fan_in)
        w = jax.random.uniform(kw, (fan_in, fan_out), jnp.float32, -bound, bound)
        b = jax.random.uniform(kb, (1, fan_out), jnp.float32, -bound, bound)
        return w, b

    keys = jax.random.split(key, 6)
    w_eh, b_eh = linear(keys[0], n_input, n_hidden)
    w_emu, b_emu = linear(keys[1], n_hidden, n_latent)
    w_elv, b_elv = linear(keys[2], n_hidden, n_latent)
    w_dh, b_dh = linear(keys[3], n_latent, n_hidden)
    w_dmu, b_dmu = linear(keys[4], n_hidden, n_input)
    w_dlv, b_dlv = linear(keys[5], n_hidden, 1)
    return (w_eh, b_eh, w_emu, b_emu, w_elv, b_elv,
            w_dh, b_dh, w_dmu, b_dmu, w_dlv, b_dlv)


def vae_forward_reference(x, eps_kbl, params):
    """Pure-JAX mirror of the PyTorch forward (eps given sample-major (k,B,L))."""
    (w_eh, b_eh, w_emu, b_emu, w_elv, b_elv,
     w_dh, b_dh, w_dmu, b_dmu, w_dlv, b_dlv) = params
    h = jax.nn.relu(x @ w_eh + b_eh)
    enc_mu = h @ w_emu + b_emu
    enc_lv = h @ w_elv + b_elv
    std = jnp.exp(0.5 * enc_lv)
    eps_bkl = jnp.transpose(eps_kbl, (1, 0, 2))                      # (B, k, L)
    z = eps_bkl * std[:, None, :] + enc_mu[:, None, :]
    hd = jax.nn.relu(z @ w_dh + b_dh[None])
    dec_mu = hd @ w_dmu + b_dmu[None]
    dec_lv = hd @ w_dlv + b_dlv[None]
    return dec_mu, dec_lv, enc_mu, enc_lv, z


if __name__ == "__main__":
    B, D_IN, H, L, K = 4, 40, 64, 2, 3

    key = jax.random.PRNGKey(0)
    k_params, k_x, k_eps = jax.random.split(key, 3)

    params = init_params(k_params, D_IN, H, L)
    w_slab, layout = prepare_vae_params(params)        # one-time packing
    vae_forward = make_vae_forward(w_slab, layout)

    x = jax.random.normal(k_x, (B, D_IN), jnp.float32)
    # torch.randn(B, k, L) equivalent, supplied sample-major (k, B, L) for the kernel
    eps = jax.random.normal(k_eps, (K, B, L), jnp.float32)

    outs = vae_forward(x, eps)
    outs = jax.block_until_ready(outs)

    refs = vae_forward_reference(x, eps, params)
    for got, ref in zip(outs, refs):
        np.testing.assert_allclose(np.asarray(got), np.asarray(ref),
                                   rtol=1e-3, atol=1e-3)

    print("KERNEL_OK")
</pallas_src>

<mosaic_0001>
module attributes {stable_mosaic.version = 11 : i64} {
  func.func @kernel(%arg0: memref<8x128xf32, #tpu.memory_space<vmem>>, %arg1: memref<24x2xf32, #tpu.memory_space<vmem>>, %arg2: memref<424x128xf32, #tpu.memory_space<vmem>>, %arg3: memref<8x128xf32, #tpu.memory_space<vmem>>, %arg4: memref<24x128xf32, #tpu.memory_space<vmem>>) attributes {dimension_semantics = [], scalar_prefetch = 0 : i64, scratch_operands = 0 : i64, tpu.core_type = #tpu.core_type<tc>} {
    %c0 = arith.constant 0 : index
    %c0_0 = arith.constant 0 : index
    %0 = vector.load %arg0[%c0, %c0_0] : memref<8x128xf32, #tpu.memory_space<vmem>>, vector<8x128xf32>
    %c0_1 = arith.constant 0 : index
    %c0_2 = arith.constant 0 : index
    %1 = vector.load %arg2[%c0_1, %c0_2] : memref<424x128xf32, #tpu.memory_space<vmem>>, vector<128x128xf32>
    %cst = arith.constant dense<0.000000e+00> : vector<8x128xf32>
    %2 = tpu.matmul %0, %1, %cst {dimension_numbers = #tpu.dot_dimension_numbers<[1], [0], [0], [1], [0, 0, 1, 1], [], []>} : vector<8x128xf32>, vector<128x128xf32>, vector<8x128xf32> -> vector<8x128xf32>
    %c128 = arith.constant 128 : index
    %c0_3 = arith.constant 0 : index
    %3 = vector.load %arg2[%c128, %c0_3] : memref<424x128xf32, #tpu.memory_space<vmem>>, vector<1x128xf32>
    %4 = vector.broadcast %3 : vector<1x128xf32> to vector<8x128xf32>
    %5 = arith.addf %2, %4 : vector<8x128xf32>
    %cst_4 = arith.constant 0.000000e+00 : f32
    %6 = vector.broadcast %cst_4 : f32 to vector<8x128xf32>
    %7 = arith.maximumf %5, %6 : vector<8x128xf32>
    %c136 = arith.constant 136 : index
    %c0_5 = arith.constant 0 : index
    %8 = vector.load %arg2[%c136, %c0_5] : memref<424x128xf32, #tpu.memory_space<vmem>>, vector<128x128xf32>
    %cst_6 = arith.constant dense<0.000000e+00> : vector<8x128xf32>
    %9 = tpu.matmul %7, %8, %cst_6 {dimension_numbers = #tpu.dot_dimension_numbers<[1], [0], [0], [1], [0, 0, 1, 1], [], []>} : vector<8x128xf32>, vector<128x128xf32>, vector<8x128xf32> -> vector<8x128xf32>
    %c264 = arith.constant 264 : index
    %c0_7 = arith.constant 0 : index
    %10 = vector.load %arg2[%c264, %c0_7] : memref<424x128xf32, #tpu.memory_space<vmem>>, vector<1x128xf32>
    %11 = vector.broadcast %10 : vector<1x128xf32> to vector<8x128xf32>
    %12 = arith.addf %9, %11 : vector<8x128xf32>
    %c0_8 = arith.constant 0 : index
    %c0_9 = arith.constant 0 : index
    %13 = vector.load %arg3[%c0_8, %c0_9] : memref<8x128xf32, #tpu.memory_space<vmem>>, vector<8x128xf32>
    tpu.vector_store %arg3[%c0_8, %c0_9], %12 {strides = array<i32>} : memref<8x128xf32, #tpu.memory_space<vmem>>, vector<8x128xf32>,
    %14 = vector.extract_strided_slice %12 {offsets = [0, 0], sizes = [8, 2], strides = [1, 1]} : vector<8x128xf32> to vector<8x2xf32>
    %15 = vector.extract_strided_slice %12 {offsets = [0, 2], sizes = [8, 2], strides = [1, 1]} : vector<8x128xf32> to vector<8x2xf32>
    %cst_10 = arith.constant 5.000000e-01 : f32
    %16 = vector.broadcast %cst_10 : f32 to vector<8x2xf32>
    %17 = arith.mulf %16, %15 : vector<8x2xf32>
    %18 = math.exp %17 : vector<8x2xf32>
    %c0_11 = arith.constant 0 : index
    %c0_12 = arith.constant 0 : index
    %19 = vector.load %arg1[%c0_11, %c0_12] : memref<24x2xf32, #tpu.memory_space<vmem>>, vector<24x2xf32>
    %20 = tpu.concatenate %18, %18, %18 in 0 : vector<8x2xf32>, vector<8x2xf32>, vector<8x2xf32> -> vector<24x2xf32>
    %21 = arith.mulf %19, %20 : vector<24x2xf32>
    %22 = tpu.concatenate %14, %14, %14 in 0 : vector<8x2xf32>, vector<8x2xf32>, vector<8x2xf32> -> vector<24x2xf32>
    %23 = arith.addf %21, %22 : vector<24x2xf32>
    %c272 = arith.constant 272 : index
    %c0_13 = arith.constant 0 : index
    %24 = vector.load %arg2[%c272, %c0_13] : memref<424x128xf32, #tpu.memory_space<vmem>>, vector<2x128xf32>
    %c280 = arith.constant 280 : index
    %c0_14 = arith.constant 0 : index
    %25 = vector.load %arg2[%c280, %c0_14] : memref<424x128xf32, #tpu.memory_space<vmem>>, vector<1x128xf32>
    %26 = vector.extract_strided_slice %23 {offsets = [0, 0], sizes = [24, 1], strides = [1, 1]} : vector<24x2xf32> to vector<24x1xf32>
    %27 = vector.extract_strided_slice %24 {offsets = [0, 0], sizes = [1, 128], strides = [1, 1]} : vector<2x128xf32> to vector<1x128xf32>
    %28 = vector.broadcast %26 : vector<24x1xf32> to vector<24x128xf32>
    %29 = vector.broadcast %27 : vector<1x128xf32> to vector<24x128xf32>
    %30 = arith.mulf %28, %29 : vector<24x128xf32>
    %31 = vector.broadcast %25 : vector<1x128xf32> to vector<24x128xf32>
    %32 = arith.addf %31, %30 : vector<24x128xf32>
    %33 = vector.extract_strided_slice %23 {offsets = [0, 1], sizes = [24, 1], strides = [1, 1]} : vector<24x2xf32> to vector<24x1xf32>
    %34 = vector.extract_strided_slice %24 {offsets = [1, 0], sizes = [1, 128], strides = [1, 1]} : vector<2x128xf32> to vector<1x128xf32>
    %35 = vector.broadcast %33 : vector<24x1xf32> to vector<24x128xf32>
    %36 = vector.broadcast %34 : vector<1x128xf32> to vector<24x128xf32>
    %37 = arith.mulf %35, %36 : vector<24x128xf32>
    %38 = arith.addf %32, %37 : vector<24x128xf32>
    %cst_15 = arith.constant 0.000000e+00 : f32
    %39 = vector.broadcast %cst_15 : f32 to vector<24x128xf32>
    %40 = arith.maximumf %38, %39 : vector<24x128xf32>
    %c288 = arith.constant 288 : index
    %c0_16 = arith.constant 0 : index
    %41 = vector.load %arg2[%c288, %c0_16] : memref<424x128xf32, #tpu.memory_space<vmem>>, vector<128x128xf32>
    %cst_17 = arith.constant dense<0.000000e+00> : vector<24x128xf32>
    %42 = tpu.matmul %40, %41, %cst_17 {dimension_numbers = #tpu.dot_dimension_numbers<[1], [0], [0], [1], [0, 0, 1, 1], [], []>} : vector<24x128xf32>, vector<128x128xf32>, vector<24x128xf32> -> vector<24x128xf32>
    %c416 = arith.constant 416 : index
    %c0_18 = arith.constant 0 : index
    %43 = vector.load %arg2[%c416, %c0_18] : memref<424x128xf32, #tpu.memory_space<vmem>>, vector<1x128xf32>
    %44 = vector.broadcast %43 : vector<1x128xf32> to vector<24x128xf32>
    %45 = arith.addf %42, %44 : vector<24x128xf32>
    %c0_19 = arith.constant 0 : index
    %c0_20 = arith.constant 0 : index
    %46 = vector.load %arg4[%c0_19, %c0_20] : memref<24x128xf32, #tpu.memory_space<vmem>>, vector<24x128xf32>
    tpu.vector_store %arg4[%c0_19, %c0_20], %45 {strides = array<i32>} : memref<24x128xf32, #tpu.memory_space<vmem>>, vector<24x128xf32>,
    %c0_21 = arith.constant 0 : index
    %c0_22 = arith.constant 0 : index
    %47 = vector.load %arg4[%c0_21, %c0_22] : memref<24x128xf32, #tpu.memory_space<vmem>>, vector<24x2xf32>
    tpu.vector_store %arg4[%c0_21, %c0_22], %23 {strides = array<i32>} : memref<24x128xf32, #tpu.memory_space<vmem>>, vector<24x2xf32>,
    return
  }
}

</mosaic_0001>

<bundles_post_ra>
// kernel: _vae_forward.1
= control target key start
LH: loop header
LB: loop body
LE: loop exit
PB: predicated region body
PF: predicated region fallthrough
CT: control target
= control target key end

     0   :  { %10 = vsyncpa [#allocation3], 0  ;;  %s295_s18 = smov [#allocation2]   ;;  %s296_s20 = smov 128   ;;  %s377_s0 = inlined_call_operand.vmem [shape: f32[8,128], index: 0, kind: input, shape index: {}]   ;;  %s378_s1 = inlined_call_operand.vmem [shape: f32[24,2], index: 1, kind: input, shape index: {}]   ;;  %s379_s2 = inlined_call_operand.hbm [shape: f32[424,128], index: 2, kind: input, shape index: {}]   ;;  %s380_s3 = inlined_call_operand.vmem [shape: f32[8,128], index: 3, kind: output, shape index: {0}]   ;;  %s381_s4 = inlined_call_operand.vmem [shape: f32[24,128], index: 4, kind: output, shape index: {1}]  }
   0x1   :  { %s19_s17 = sshll.u32 %s379_s2, 4  ;;  %s21_s19 = sshll.u32 %s295_s18, 4  ;;  %s20_s17 = int_to_ptr.hbm [resolvable:$true] %s19_s17  ;;  %s22_s19 = int_to_ptr.vmem [resolvable:$true] %s21_s19 }
   0x2   :  { %s297_s21 = smov 8  }
   0x3   :  { %27 = dma.hbm_to_vmem [thread:$0]  %s20_s17, 6784, %s22_s19, [#allocation3], %s296_s20, %s296_s20, %s297_s21  }
   0x4   :  { %293 = dma.done.wait [#allocation3], 6784  }
   0x5   :  { %294 = vsyncadd [#allocation3], 4294960512  ;;  %v48_v0 = vld [vmem:[#allocation2 + $0x78] sm:$0xff]  ;;  %v47_v1 = vld [vmem:[#allocation2 + $0x70] sm:$0xff]  ;;  %v299_v43 = vmov 1   ;;  %v300_v44 = vmov 0  }
   0x6   :  { %51 = vmatpush.msra.mxu0 %v48_v0  ;;  %v46_v2 = vld [vmem:[#allocation2 + $0x68] sm:$0xff]  ;;  %v45_v3 = vld [vmem:[#allocation2 + $0x60] sm:$0xff]  ;;  %v44_v5 = vld [vmem:[#allocation2 + $0x58] sm:$0xff]  ;;  %257 = vset.pattern.permute.xlu1 %v299_v43  ;;  %vm221_vm0 = vcmask 15360  }
   0x7   :  { %v87_v4 = vld [vmem:[#allocation2 + $0x100] sm:$0xff]  ;;  %v86_v6 = vld [vmem:[#allocation2 + $0xf8] sm:$0xff]  ;;  %v85_v7 = vld [vmem:[#allocation2 + $0xf0] sm:$0xff]  ;;  %259 = vset.pattern.permute.xlu2 %v300_v44  ;;  %256 = vset.pattern.permute.xlu0 %v300_v44 }
   0x8   :  { %52 = vmatpush.msra.mxu0 %v47_v1  ;;  %90 = vmatpush.msra.mxu1 %v87_v4  ;;  %v43_v8 = vld [vmem:[#allocation2 + $0x50] sm:$0xff]  ;;  %v84_v9 = vld [vmem:[#allocation2 + $0xe8] sm:$0xff]  ;;  %v83_v11 = vld [vmem:[#allocation2 + $0xe0] sm:$0xff] }
   0x9   :  { %v42_v10 = vld [vmem:[#allocation2 + $0x48] sm:$0xff]  ;;  %v41_v12 = vld [vmem:[#allocation2 + $0x40] sm:$0xff]  ;;  %v82_v13 = vld [vmem:[#allocation2 + $0xd8] sm:$0xff] }
   0xa   :  { %53 = vmatpush.msra.mxu0 %v46_v2  ;;  %91 = vmatpush.msra.mxu1 %v86_v6  ;;  %v40_v14 = vld [vmem:[#allocation2 + $0x38] sm:$0xff]  ;;  %v81_v15 = vld [vmem:[#allocation2 + $0xd0] sm:$0xff]  ;;  %v80_v17 = vld [vmem:[#allocation2 + $0xc8] sm:$0xff] }
   0xb   :  { %v39_v16 = vld [vmem:[#allocation2 + $0x30] sm:$0xff]  ;;  %v38_v18 = vld [vmem:[#allocation2 + $0x28] sm:$0xff]  ;;  %v79_v19 = vld [vmem:[#allocation2 + $0xc0] sm:$0xff] }
   0xc   :  { %54 = vmatpush.msra.mxu0 %v45_v3  ;;  %92 = vmatpush.msra.mxu1 %v85_v7  ;;  %v37_v20 = vld [vmem:[#allocation2 + $0x20] sm:$0xff]  ;;  %v78_v21 = vld [vmem:[#allocation2 + $0xb8] sm:$0xff]  ;;  %v77_v23 = vld [vmem:[#allocation2 + $0xb0] sm:$0xff] }
   0xd   :  { %v36_v22 = vld [vmem:[#allocation2 + $0x18] sm:$0xff]  ;;  %v35_v24 = vld [vmem:[#allocation2 + $0x10] sm:$0xff]  ;;  %v76_v25 = vld [vmem:[#allocation2 + $0xa8] sm:$0xff] }
   0xe   :  { %55 = vmatpush.msra.mxu0 %v44_v5  ;;  %93 = vmatpush.msra.mxu1 %v84_v9  ;;  %v34_v26 = vld [vmem:[#allocation2 + $0x8] sm:$0xff]  ;;  %v75_v27 = vld [vmem:[#allocation2 + $0xa0] sm:$0xff]  ;;  %v74_v30 = vld [vmem:[#allocation2 + $0x98] sm:$0xff] }
   0xf   :  { %v33_v28 = vld [vmem:[#allocation2] sm:$0xff]  ;;  %v73_v31 = vld [vmem:[#allocation2 + $0x90] sm:$0xff]  ;;  %v72_v32 = vld [vmem:[#allocation2 + $0x88] sm:$0xff] }
  0x10   :  { %56 = vmatpush.msra.mxu0 %v43_v8  ;;  %94 = vmatpush.msra.mxu1 %v83_v11  ;;  %v32_v29 = vld [vmem:[%s377_s0] sm:$0xff]  ;;  %v264_v37 = vld [vmem:[#allocation2 + $0x108] ss:$0 sm:$0xff]  ;;  %s298_s0 = smov 126   ;;  %v116_v46 = vld [vmem:[%s378_s1 + $0x10] sm:$0xff] }
  0x11   :  { %v263_v33 = vld [vmem:[#allocation2 + $0x80] ss:$0 sm:$0xff]  ;;  %v115_v45 = vld [vmem:[%s378_s1 + $0x8] sm:$0xff]  ;;  %v189_v55 = vld [vmem:[#allocation2 + $0x198] sm:$0xff] }
  0x12   :  { %57 = vmatpush.msra.mxu0 %v42_v10  ;;  %95 = vmatpush.msra.mxu1 %v82_v13  ;;  %v114_v52 = vld [vmem:[%s378_s1] sm:$0xff]  ;;  %v188_v56 = vld [vmem:[#allocation2 + $0x190] sm:$0xff]  ;;  %v187_v57 = vld [vmem:[#allocation2 + $0x188] sm:$0xff] }
  0x13   :  { %234 = vmatpush.msra.mxu3 %v189_v55  ;;  %192 = vmatpush.msra.mxu2 %v189_v55  ;;  %v186_v58 = vld [vmem:[#allocation2 + $0x180] sm:$0xff]  ;;  %v185_v59 = vld [vmem:[#allocation2 + $0x178] sm:$0xff]  ;;  %v184_v60 = vld [vmem:[#allocation2 + $0x170] sm:$0xff] }
  0x14   :  { %58 = vmatpush.msra.mxu0 %v41_v12  ;;  %96 = vmatpush.msra.mxu1 %v81_v15  ;;  %v183_v61 = vld [vmem:[#allocation2 + $0x168] sm:$0xff]  ;;  %v182_v62 = vld [vmem:[#allocation2 + $0x160] sm:$0xff]  ;;  %v181_v63 = vld [vmem:[#allocation2 + $0x158] sm:$0xff] }
  0x15   :  { %235 = vmatpush.msra.mxu3 %v188_v56  ;;  %193 = vmatpush.msra.mxu2 %v188_v56  ;;  %v180_v0 = vld [vmem:[#allocation2 + $0x150] sm:$0xff]  ;;  %v179_v1 = vld [vmem:[#allocation2 + $0x148] sm:$0xff]  ;;  %v178_v2 = vld [vmem:[#allocation2 + $0x140] sm:$0xff] }
  0x16   :  { %59 = vmatpush.msra.mxu0 %v40_v14  ;;  %97 = vmatpush.msra.mxu1 %v80_v17  ;;  %v177_v3 = vld [vmem:[#allocation2 + $0x138] sm:$0xff]  ;;  %v176_v4 = vld [vmem:[#allocation2 + $0x130] sm:$0xff]  ;;  %v175_v5 = vld [vmem:[#allocation2 + $0x128] sm:$0xff] }
  0x17   :  { %236 = vmatpush.msra.mxu3 %v187_v57  ;;  %194 = vmatpush.msra.mxu2 %v187_v57  ;;  %v174_v6 = vld [vmem:[#allocation2 + $0x120] sm:$0xff]  ;;  %v127_v7 = vld [vmem:[#allocation2 + $0x110] sm:$0x3]  ;;  %v265_v12 = vld [vmem:[#allocation2 + $0x118] ss:$0 sm:$0xff] }
  0x18   :  { %60 = vmatpush.msra.mxu0 %v39_v16  ;;  %98 = vmatpush.msra.mxu1 %v79_v19  ;;  %v144_v9 = vperm.slane %v127_v7, 0  ;;  %v164_v13 = vperm.slane %v127_v7, 1 }
  0x19   :  { %237 = vmatpush.msra.mxu3 %v186_v58  ;;  %195 = vmatpush.msra.mxu2 %v186_v58 }
  0x1a   :  { %61 = vmatpush.msra.mxu0 %v38_v18  ;;  %99 = vmatpush.msra.mxu1 %v78_v21 }
  0x1b   :  { %238 = vmatpush.msra.mxu3 %v185_v59  ;;  %196 = vmatpush.msra.mxu2 %v185_v59 }
  0x1c   :  { %62 = vmatpush.msra.mxu0 %v37_v20  ;;  %100 = vmatpush.msra.mxu1 %v77_v23 }
  0x1d   :  { %239 = vmatpush.msra.mxu3 %v184_v60  ;;  %197 = vmatpush.msra.mxu2 %v184_v60 }
  0x1e   :  { %63 = vmatpush.msra.mxu0 %v36_v22  ;;  %101 = vmatpush.msra.mxu1 %v76_v25 }
  0x1f   :  { %240 = vmatpush.msra.mxu3 %v183_v61  ;;  %198 = vmatpush.msra.mxu2 %v183_v61 }
  0x20   :  { %64 = vmatpush.msra.mxu0 %v35_v24  ;;  %102 = vmatpush.msra.mxu1 %v75_v27 }
  0x21   :  { %241 = vmatpush.msra.mxu3 %v182_v62  ;;  %199 = vmatpush.msra.mxu2 %v182_v62 }
  0x22   :  { %65 = vmatpush.msra.mxu0 %v34_v26  ;;  %103 = vmatpush.msra.mxu1 %v74_v30 }
  0x23   :  { %242 = vmatpush.msra.mxu3 %v181_v63  ;;  %200 = vmatpush.msra.mxu2 %v181_v63 }
  0x24   :  { %66 = vmatpush.msra.mxu0 %v33_v28  ;;  %104 = vmatpush.msra.mxu1 %v73_v31 }
  0x25   :  { %67 = vmatmul.f32.vlgmr.msra.gmra.mxu0 %v32_v29  ;;  %243 = vmatpush.msra.mxu3 %v180_v0 }
  0x26   :  { %105 = vmatpush.msra.mxu1 %v72_v32  ;;  %201 = vmatpush.msra.mxu2 %v180_v0  ;;  %v266_v32 = vld [vmem:[#allocation2 + $0x1a0] ss:$0 sm:$0xff] }
  0x27   :  { %244 = vmatpush.msra.mxu3 %v179_v1 }
  0x28   :  { %202 = vmatpush.msra.mxu2 %v179_v1 }
  0x29   :  { %245 = vmatpush.msra.mxu3 %v178_v2 }
  0x2a   :  { %203 = vmatpush.msra.mxu2 %v178_v2 }
  0x2b   :  { %246 = vmatpush.msra.mxu3 %v177_v3 }
  0x2c   :  { %204 = vmatpush.msra.mxu2 %v177_v3 }
  0x2d   :  { %247 = vmatpush.msra.mxu3 %v176_v4 }
  0x2e   :  { %205 = vmatpush.msra.mxu2 %v176_v4 }
  0x2f   :  { %248 = vmatpush.msra.mxu3 %v175_v5 }
  0x30   :  { %206 = vmatpush.msra.mxu2 %v175_v5 }
  0x31   :  { %249 = vmatpush.msra.mxu3 %v174_v6 }
  0x32   :  { %207 = vmatpush.msra.mxu2 %v174_v6 }
  0xa2   :  { %v68_v34 = vpop.f32.mrf.mxu0 }
  0xa3   :  { %v69_v35 = vadd.f32 %v263_v33, %v68_v34 }
  0xa5   :  { %v71_v36 = vmax.f32 %v69_v35, 0.0 }
  0xa7   :  { %106 = vmatmul.f32.vlgmr.msra.gmra.mxu1 %v71_v36 }
 0x124   :  { %v107_v38 = vpop.f32.mrf.mxu1 }
 0x125   :  { %v108_v39 = vadd.f32 %v264_v37, %v107_v38 }
 0x127   :  { %110 = vst [vmem:[%s380_s3] sm:$0xff] %v108_v39  ;;  %v111_v40 = vmul.f32 0.5, %v108_v39 }
 0x129   :  { %v112_v41 = vmul.f32 1.442695, %v111_v40 }
 0x12b   :  { %267 = vpow2.f32 %v112_v41 }
 0x131   :  { %v268_v42 = vpop.eup %267 }
 0x132   :  { %118 = vrot.lane.b32.xlu0 %v268_v42, %s298_s0 }
 0x1a4   :  { %v119_v47 = vpop.permute.xlu0 %118 }
 0x1a5   :  { %v122_v48 = vmul.f32 %v119_v47, %v115_v45  ;;  %v123_v49 = vmul.f32 %v119_v47, %v116_v46  ;;  %v121_v53 = vmul.f32 %v119_v47, %v114_v52 }
 0x1a7   :  { %v341_v50 = vadd.f32 %v123_v49, %v108_v39  ;;  %v343_v51 = vadd.f32 %v122_v48, %v108_v39  ;;  %v351_v54 = vadd.f32 %v121_v53, %v108_v39 }
 0x1a9   :  { %141 = vperm.xlu2 %259, %v341_v50   ;;  %157 = vperm.xlu1 %257, %v343_v51  }
 0x1aa   :  { %136 = vperm.xlu0 %256, %v343_v51  }
 0x1b1   :  { %260 = vset.pattern.permute.xlu2 %v299_v43  ;;  %258 = vset.pattern.permute.xlu1 %v300_v44 }
 0x1b2   :  { %153 = vperm.xlu2 %260, %v351_v54   ;;  %131 = vperm.xlu1 %258, %v351_v54  }
 0x1b3   :  { %262 = vset.pattern.permute.xlu0 %v299_v43 }
 0x1ba   :  { %261 = vset.pattern.permute.xlu1 %v299_v43 }
 0x1bb   :  { %161 = vperm.xlu1 %261, %v341_v50  }
 0x203   :  { %v142_v8 = vpop.permute.xlu2 %141 }
 0x204   :  { %v147_v25 = vmul.f32 %v144_v9, %v142_v8 }
 0x206   :  { %v151_v28 = vadd.f32 %v265_v12, %v147_v25 }
 0x20c   :  { %v154_v19 = vpop.permute.xlu2 %153 }
 0x20d   :  { %v165_v22 = vmul.f32 %v164_v13, %v154_v19 }
 0x21b   :  { %v158_v10 = vpop.permute.xlu1 %157 }
 0x21c   :  { %v137_v11 = vpop.permute.xlu0 %136  ;;  %v166_v15 = vmul.f32 %v164_v13, %v158_v10 }
 0x21d   :  { %v146_v14 = vmul.f32 %v144_v9, %v137_v11 }
 0x21f   :  { %v150_v16 = vadd.f32 %v265_v12, %v146_v14 }
 0x221   :  { %v169_v17 = vadd.f32 %v166_v15, %v150_v16 }
 0x223   :  { %v172_v18 = vmax.f32 %v169_v17, 0.0 }
 0x224   :  { %v132_v20 = vpop.permute.xlu1 %131 }
 0x225   :  { %211 = vmatmul.f32.vlgmr.msra.gmra.mxu3 %v172_v18  ;;  %v145_v21 = vmul.f32 %v144_v9, %v132_v20 }
 0x227   :  { %v149_v23 = vadd.f32 %v265_v12, %v145_v21 }
 0x229   :  { %v168_v24 = vadd.f32 %v165_v22, %v149_v23 }
 0x22b   :  { %v171_v26 = vmax.f32 %v168_v24, 0.0 }
 0x22d   :  { %208 = vmatmul.f32.vlgmr.msra.gmra.mxu2 %v171_v26  ;;  %v162_v27 = vpop.permute.xlu1 %161 }
 0x22e   :  { %v167_v29 = vmul.f32 %v164_v13, %v162_v27 }
 0x230   :  { %v170_v30 = vadd.f32 %v167_v29, %v151_v28 }
 0x232   :  { %v173_v31 = vmax.f32 %v170_v30, 0.0 }
 0x234   :  { %214 = vmatmul.f32.gmra.mxu3 %v173_v31 }
 0x2a8   :  { %v212_v33 = vpop.f32.mrf.mxu3 }
 0x2a9   :  { %v213_v34 = vadd.f32 %v266_v32, %v212_v33 }
 0x2ab   :  { %219 = vst [vmem:[%s381_s4 + $0x8] sm:$0xff] %v213_v34 }
 0x2ac   :  { %223 = vst.msk [vmem:[%s381_s4 + $0x8] sm:$0xff] %vm221_vm0, %v343_v51 }
 0x2b0   :  { %v209_v35 = vpop.f32.mrf.mxu2 }
 0x2b1   :  { %v210_v36 = vadd.f32 %v266_v32, %v209_v35 }
 0x2b3   :  { %218 = vst [vmem:[%s381_s4] sm:$0xff] %v210_v36 }
 0x2b4   :  { %222 = vst.msk [vmem:[%s381_s4] sm:$0xff] %vm221_vm0, %v351_v54 }
 0x2b7   :  { %v215_v37 = vpop.f32.mrf.mxu3 }
 0x2b8   :  { %v216_v38 = vadd.f32 %v266_v32, %v215_v37 }
 0x2ba   :  { %220 = vst [vmem:[%s381_s4 + $0x10] sm:$0xff] %v216_v38 }
 0x2bb   :  { %224 = vst.msk [vmem:[%s381_s4 + $0x10] sm:$0xff] %vm221_vm0, %v341_v50 }
 0x2bc   :  { %233 = vsyncpa [#allocation3], 1 }

</bundles_post_ra>
